<compile_context>
chip_gen: v7x
topology: tpu7x:2x2x1
jax: 0.10.0
libtpu: 0.0.40
codegen_flags: <defaults>
</compile_context>

<pallas_src>
import jax
import jax.numpy as jnp
from jax.experimental import pallas as pl
from jax.experimental.pallas import tpu as pltpu


def _round_up(x: int, m: int) -> int:
    return (x + m - 1) // m * m


# ----------------------------------------------------------------------------
# Path 1: VMEM-resident table, one-hot MXU gather.
# ----------------------------------------------------------------------------
def _onehot_gather_kernel(idx_ref, emb_ref, out_ref):
    idx = idx_ref[...]                                   # (TB, 1) int32
    tb = idx.shape[0]
    num_emb = emb_ref.shape[0]
    iota = jax.lax.broadcasted_iota(jnp.int32, (tb, num_emb), 1)
    one_hot = (iota == idx).astype(emb_ref.dtype)        # (TB, V)
    out_ref[...] = jnp.dot(
        one_hot, emb_ref[...], preferred_element_type=jnp.float32
    ).astype(out_ref.dtype)                              # dense (TB, D) store


# ----------------------------------------------------------------------------
# Path 2: table in HBM, batched per-row DMA gather into VMEM scratch.
# ----------------------------------------------------------------------------
def _dma_gather_kernel(idx_ref, emb_hbm, out_ref, buf, sem):
    tb, _ = buf.shape
    base = pl.program_id(0) * tb
    window = min(8, tb)            # row-DMAs kept in flight

    def start(r):
        row = idx_ref[base + r]
        pltpu.make_async_copy(
            emb_hbm.at[pl.ds(row, 1), :], buf.at[pl.ds(r, 1), :], sem
        ).start()

    def wait(r):
        # Only shape matters for the wait; src slice is a dummy.
        pltpu.make_async_copy(
            emb_hbm.at[pl.ds(0, 1), :], buf.at[pl.ds(r, 1), :], sem
        ).wait()

    # Prime the window (static unroll).
    for r in range(window):
        start(r)

    # Steady state: retire one completion, issue the next row copy.
    @pl.loop(0, tb - window)
    def _(r):
        wait(r)
        start(r + window)

    # Drain.
    @pl.loop(tb - window, tb)
    def _(r):
        wait(r)

    out_ref[...] = buf[...]        # single dense (TB, D) store


# ----------------------------------------------------------------------------
# Wrapper (== NodeIdEmbedding.forward semantics: emb_table[node_idx]).
# ----------------------------------------------------------------------------
_RESIDENT_TABLE_BUDGET_BYTES = 8 * 1024 * 1024   # conservative across v5e/v6e/v7x


def node_id_embedding(node_idx: jax.Array, emb_table: jax.Array,
                      *, tile_rows: int = 256, force_path: str | None = None):
    num_emb, emb_dim = emb_table.shape
    n = node_idx.shape[0]
    dtype = emb_table.dtype

    # Clamp indices (nn.Embedding would error; here we guarantee no OOB DMA).
    idx = jnp.clip(node_idx.astype(jnp.int32), 0, num_emb - 1)

    # Index-tile size: multiple of 8 sublanes, dense output tiles.
    tb = max(8, min(_round_up(tile_rows, 8), _round_up(n, 8)))
    n_pad = _round_up(n, tb)
    idx = jnp.pad(idx, (0, n_pad - n))
    grid = (n_pad // tb,)

    table_bytes = num_emb * emb_dim * emb_table.dtype.itemsize
    path = force_path or (
        "resident" if table_bytes <= _RESIDENT_TABLE_BUDGET_BYTES else "dma"
    )

    compiler_params = pltpu.CompilerParams(
        dimension_semantics=("parallel",),          # independent output tiles
        vmem_limit_bytes=32 * 1024 * 1024,          # safe on v5e/v6e/v7x
    )

    if path == "resident":
        out = pl.pallas_call(
            _onehot_gather_kernel,
            grid=grid,
            in_specs=[
                pl.BlockSpec((tb, 1), lambda i: (i, 0)),             # indices
                pl.BlockSpec((num_emb, emb_dim), lambda i: (0, 0)),  # resident table
            ],
            out_specs=pl.BlockSpec((tb, emb_dim), lambda i: (i, 0)),
            out_shape=jax.ShapeDtypeStruct((n_pad, emb_dim), dtype),
            compiler_params=compiler_params,
        )(idx.reshape(n_pad, 1), emb_table)
    else:
        grid_spec = pltpu.PrefetchScalarGridSpec(
            num_scalar_prefetch=1,                   # node_idx -> SMEM
            grid=grid,
            in_specs=[pl.BlockSpec(memory_space=pl.ANY)],   # table stays in HBM
            out_specs=pl.BlockSpec((tb, emb_dim), lambda i, idx_ref: (i, 0)),
            scratch_shapes=[
                pltpu.VMEM((tb, emb_dim), dtype),
                pltpu.SemaphoreType.DMA(()),
            ],
        )
        out = pl.pallas_call(
            _dma_gather_kernel,
            grid_spec=grid_spec,
            out_shape=jax.ShapeDtypeStruct((n_pad, emb_dim), dtype),
            compiler_params=compiler_params,
        )(idx, emb_table)

    return out[:n]


if __name__ == "__main__":
    key = jax.random.PRNGKey(0)
    k_emb, k_idx1, k_idx2 = jax.random.split(key, 3)

    num_embeddings = 64
    emb_dim = 128

    # Deterministic stand-in for the pretrained table (torch.load(emb_path)).
    emb_table = jax.random.normal(
        k_emb, (num_embeddings, emb_dim), dtype=jnp.float32
    )

    # Small case (module-scale check) + a larger, non-tile-multiple case that
    # exercises index padding and a multi-step grid.
    idx_small = jax.random.randint(
        k_idx1, (8,), 0, num_embeddings, dtype=jnp.int32
    )
    idx_big = jax.random.randint(
        k_idx2, (300,), 0, num_embeddings, dtype=jnp.int32
    )

    for idx in (idx_small, idx_big):
        ref = jnp.take(emb_table, idx, axis=0)
        for path in ("resident", "dma"):
            out = node_id_embedding(
                idx, emb_table, tile_rows=128, force_path=path
            )
            out = jax.block_until_ready(out)
            assert out.shape == ref.shape, (path, out.shape, ref.shape)
            assert out.dtype == ref.dtype
            assert jnp.allclose(out, ref), (
                f"Pallas embedding gather mismatch (path={path}, n={idx.shape[0]})"
            )

    print("KERNEL_OK")
</pallas_src>

<mosaic_0001>
module attributes {stable_mosaic.version = 11 : i64} {
  func.func @_onehot_gather_kernel(%arg0: i32, %arg1: memref<8x1xi32, #tpu.memory_space<vmem>>, %arg2: memref<64x128xf32, #tpu.memory_space<vmem>>, %arg3: memref<8x128xf32, #tpu.memory_space<vmem>>) attributes {dimension_semantics = [#tpu.dimension_semantics<parallel>], iteration_bounds = array<i64: 1>, scalar_prefetch = 0 : i64, scratch_operands = 0 : i64, tpu.core_type = #tpu.core_type<tc>, window_params = [{transform_indices = @transform_0, window_bounds = array<i64: 8, 1>}, {pipeline_mode = #tpu.pipeline_mode<synchronous>, transform_indices = @transform_1, window_bounds = array<i64: 64, 128>}, {transform_indices = @transform_2, window_bounds = array<i64: 8, 128>}]} {
    %c0 = arith.constant 0 : index
    %c0_0 = arith.constant 0 : index
    %0 = vector.load %arg1[%c0, %c0_0] : memref<8x1xi32, #tpu.memory_space<vmem>>, vector<8x1xi32>
    %1 = tpu.iota {dimensions = array<i32: 1>} : vector<8x64xi32>
    %2 = vector.broadcast %0 : vector<8x1xi32> to vector<8x64xi32>
    %3 = arith.cmpi eq, %1, %2 : vector<8x64xi32>
    %4 = arith.extui %3 : vector<8x64xi1> to vector<8x64xi32>
    %5 = arith.sitofp %4 : vector<8x64xi32> to vector<8x64xf32>
    %c0_1 = arith.constant 0 : index
    %c0_2 = arith.constant 0 : index
    %6 = vector.load %arg2[%c0_1, %c0_2] : memref<64x128xf32, #tpu.memory_space<vmem>>, vector<64x128xf32>
    %cst = arith.constant dense<0.000000e+00> : vector<8x128xf32>
    %7 = tpu.matmul %5, %6, %cst {dimension_numbers = #tpu.dot_dimension_numbers<[1], [0], [0], [1], [0, 0, 1, 1], [], []>} : vector<8x64xf32>, vector<64x128xf32>, vector<8x128xf32> -> vector<8x128xf32>
    %c0_3 = arith.constant 0 : index
    %c0_4 = arith.constant 0 : index
    %8 = vector.load %arg3[%c0_3, %c0_4] : memref<8x128xf32, #tpu.memory_space<vmem>>, vector<8x128xf32>
    tpu.vector_store %arg3[%c0_3, %c0_4], %7 {strides = array<i32>} : memref<8x128xf32, #tpu.memory_space<vmem>>, vector<8x128xf32>,
    return
  }
  func.func @transform_0(%arg0: i32) -> (i32, i32) {
    %c0_i32 = arith.constant 0 : i32
    %c0_i32_0 = arith.constant 0 : i32
    return %arg0, %c0_i32 : i32, i32
  }
  func.func @transform_1(%arg0: i32) -> (i32, i32) {
    %c0_i32 = arith.constant 0 : i32
    %c0_i32_0 = arith.constant 0 : i32
    %c0_i32_1 = arith.constant 0 : i32
    return %c0_i32, %c0_i32_0 : i32, i32
  }
  func.func @transform_2(%arg0: i32) -> (i32, i32) {
    %c0_i32 = arith.constant 0 : i32
    %c0_i32_0 = arith.constant 0 : i32
    return %arg0, %c0_i32 : i32, i32
  }
}

</mosaic_0001>

<bundles_post_ra>
// kernel: tpu_custom_call.1
= control target key start
LH: loop header
LB: loop body
LE: loop exit
PB: predicated region body
PF: predicated region fallthrough
CT: control target
= control target key end

     0   :  { %7 = vsyncpa [#allocation3], 0  ;;  %s282_s0 = inlined_call_operand.vmem [shape: s32[8,1], index: 0, kind: input, shape index: {}]   ;;  %s283_s1 = inlined_call_operand.hbm [shape: f32[64,128], index: 1, kind: input, shape index: {}]   ;;  %s284_s2 = inlined_call_operand.hbm [shape: f32[8,128], index: 2, kind: output, shape index: {}]  }
   0x1   :  { %8 = vsyncpa [#allocation4], 0  ;;  %s232_s9 = smov [#allocation2]   ;;  %s184_s13 = scalar_lea.hbm %s283_s1, 1024 }
   0x2   :  { %s16_s10 = sshll.u32 %s232_s9, 4  ;;  %p185_p0 = scmp.ne.s32.totalorder %s283_s1, %s184_s13  ;;  %s17_s10 = int_to_ptr.vmem [resolvable:$true] %s16_s10 }
   0x3   :  { %p188_p1 = scmp.lt.u32.totalorder %s184_s13, %s283_s1 }
   0x5   :  { %p190_p2 = pnand %p188_p1, %p185_p0 }
   0x7   :  { %193 = shalt.err (!%p190_p2)
}
   0x8   :  { %s194_s18 = scalar_lea.vmem %s17_s10, 1024  ;;  %p199_p4 = scmp.lt.s32.totalorder %s17_s10, %s17_s10 }
   0x9   :  { %p195_p3 = scmp.ne.s32.totalorder %s17_s10, %s194_s18  ;;  %p200_p5 = scmp.lt.s32.totalorder %s194_s18, %s194_s18 }
   0xb   :  { %p201_p6 = por %p200_p5, %p199_p4 }
   0xd   :  { %p202_p7 = pnand %p201_p6, %p195_p3 }
   0xf   :  { %205 = shalt.err (!%p202_p7)
}
  0x10   :  { %s233_s19 = smov 128   ;;  %s234_s20 = smov 8  }
  0x11   :  { %22 = dma.hbm_to_vmem [thread:$0]  %s283_s1, 1024, %s17_s10, [#allocation3], %s233_s19, %s233_s19, %s234_s20  }
  0x12   :  { %228 = dma.done.wait [#allocation3], 1024  }
  0x13   :  { %229 = vsyncadd [#allocation3], 4294966272  ;;  %v235_v0 = vmov 0   ;;  %v236_v1 = vmov 0.0|0.0   ;;  %v26_v2 = vld [vmem:[%s282_s0] sm:$0xff]  ;;  %v36_v4 = vld [vmem:[#allocation2 + $0x8] sm:$0xff]  ;;  %v27_v16 = vlaneseq }
  0x14   :  { %183 = vset.pattern.permute.xlu0 %v235_v0  ;;  %163 = vmatprep.subr.bf16.mxu0 %v236_v1  ;;  %v35_v3 = vld [vmem:[#allocation2] sm:$0xff]  ;;  %v37_v6 = vld [vmem:[#allocation2 + $0x10] sm:$0xff]  ;;  %v38_v7 = vld [vmem:[#allocation2 + $0x18] sm:$0xff]  ;;  %vm237_vm0 = vmmov 0   ;;  %v238_v8 = vmov 0.0   ;;  %vm43_vm1 = vcmask 523264  }
  0x15   :  { %30 = vperm.xlu0 %183, %v26_v2   ;;  %v164_v5 = vpack.c.bf16 %v36_v4, %v35_v3  ;;  %160 = vmatprep.mubr.msk.f32.mxu0 %vm237_vm0, %v238_v8  ;;  %v167_v9 = vpack.c.bf16 %v38_v7, %v37_v6  ;;  %v39_v10 = vld [vmem:[#allocation2 + $0x20] sm:$0xff]  ;;  %v40_v11 = vld [vmem:[#allocation2 + $0x28] sm:$0xff]  ;;  %v41_v13 = vld [vmem:[#allocation2 + $0x30] sm:$0xff]  ;;  %v28_v17 = vand.u32 127, %v27_v16  ;;  %s239_s0 = smov [#allocation5]  }
  0x16   :  { %v170_v12 = vpack.c.bf16 %v40_v11, %v39_v10  ;;  %v42_v14 = vld [vmem:[#allocation2 + $0x38] sm:$0xff]  ;;  %s124_s1 = sshll.u32 %s239_s0, 4  ;;  %s125_s1 = int_to_ptr.vmem [resolvable:$true] %s124_s1 }
  0x17   :  { %165 = vmatpush3.bf16.msra.mxu0 %v164_v5  ;;  %v173_v15 = vpack.c.bf16 %v42_v14, %v41_v13  ;;  %s206_s25 = scalar_lea.vmem %s125_s1, 128  ;;  %p211_p9 = scmp.lt.s32.totalorder %s125_s1, %s125_s1 }
  0x18   :  { %166 = vmatprep.subr.bf16.mxu0 %v236_v1  ;;  %p207_p8 = scmp.ne.s32.totalorder %s125_s1, %s206_s25  ;;  %p212_p10 = scmp.lt.s32.totalorder %s206_s25, %s206_s25 }
  0x1a   :  { %p213_p11 = por %p212_p10, %p211_p9 }
  0x1b   :  { %168 = vmatpush3.bf16.msra.mxu0 %v167_v9 }
  0x1c   :  { %169 = vmatprep.subr.bf16.mxu0 %v236_v1  ;;  %p214_p12 = pnand %p213_p11, %p207_p8 }
  0x1f   :  { %171 = vmatpush3.bf16.msra.mxu0 %v170_v12 }
  0x20   :  { %172 = vmatprep.subr.bf16.mxu0 %v236_v1 }
  0x23   :  { %174 = vmatpush3.bf16.msra.mxu0 %v173_v15 }
  0x94   :  { %v31_v18 = vpop.permute.xlu0 %30 }
  0x95   :  { %vm32_vm2 = vcmp.eq.s32.totalorder %v28_v17, %v31_v18 }
  0x96   :  { %v133_v19 = vsel %vm32_vm2, 1.0, %v238_v8 }
  0x97   :  { %161 = vmatmul.mubr.msk.f32.vlgmr.msra.gmra.mrb[0].mxu0 %vm43_vm1, %v133_v19 }
 0x16a   :  { %v113_v20 = vpop.f32.mrb[0].mxu0 }
 0x16b   :  { %117 = vst [vmem:[#allocation5] sm:$0xff] %v113_v20  ;;  %v162_v21 = vpop.f32.mrb[1].mxu0 }
 0x16c   :  { %217 = shalt.err (!%p214_p12)
}
 0x16d   :  { %s218_s28 = scalar_lea.hbm %s284_s2, 128 }
 0x16e   :  { %p219_p13 = scmp.ne.s32.totalorder %s284_s2, %s218_s28  ;;  %p222_p0 = scmp.lt.u32.totalorder %s218_s28, %s284_s2 }
 0x170   :  { %p224_p1 = pnand %p222_p0, %p219_p13 }
 0x172   :  { %227 = shalt.err (!%p224_p1)
}
 0x173   :  { %127 = dma.vmem_to_hbm [thread:$0]  %s125_s1, 128, %s284_s2, [#allocation4]  }
 0x174   :  { %230 = dma.done.wait [#allocation4], 128  }
 0x175   :  { %231 = vsyncadd [#allocation4], 4294967168 }
 0x176   :  { %131 = vsyncpa [#allocation3], 1 }
 0x177   :  { %132 = vsyncpa [#allocation4], 1 }

</bundles_post_ra>
